<compile_context>
chip_gen: v7x
topology: tpu7x:2x2x1
jax: 0.10.0
libtpu: 0.0.40
codegen_flags: <defaults>
</compile_context>

<pallas_src>
import numpy as np
import jax
import jax.numpy as jnp
from jax.experimental import pallas as pl
from jax.experimental.pallas import tpu as pltpu


# --------------------------------------------------------------------------- #
# Kernel
# --------------------------------------------------------------------------- #
def _gt_layer_kernel(as_ref, h_ref, w_ref, o_ref, ah_ref):
    """Grid = (row tiles of N ["parallel"], contraction tiles of N ["arbitrary"]).

    as_ref : (num_A, bm, bk)        adjacency tiles (streamed, HBM-bound)
    h_ref  : (bk, in_c)             feature tile
    w_ref  : (num_A, in_c, out_c_p) per-adjacency effective weights (resident)
    o_ref  : (bm, out_c_p)          output tile (resident across k)
    ah_ref : (num_A, bm, in_c) f32  scratch accumulator for AH[a] = As[a] @ H
    """
    k = pl.program_id(1)
    nk = pl.num_programs(1)

    @pl.when(k == 0)
    def _():
        ah_ref[...] = jnp.zeros_like(ah_ref)

    num_A, bm, bk = as_ref.shape
    in_c = h_ref.shape[1]

    # Fused first-stage matmul: one (num_A*bm, bk) x (bk, in_c) MXU call per
    # step instead of num_A separate ones (collapsing leading dims is a layout
    # no-op because bm % 8 == 0).
    a_flat = as_ref[...].reshape(num_A * bm, bk)
    ah_ref[...] += jnp.dot(
        a_flat, h_ref[...], preferred_element_type=jnp.float32
    ).reshape(num_A, bm, in_c)

    # Finalize only once per row tile: combine the AH stack with W_eff and
    # write the (lane-dense) output block.
    @pl.when(k == nk - 1)
    def _():
        out_c_p = o_ref.shape[1]
        acc = jnp.zeros((bm, out_c_p), jnp.float32)
        for a in range(num_A):                       # num_A is tiny -> unroll
            acc = acc + jnp.dot(
                ah_ref[a], w_ref[a], preferred_element_type=jnp.float32
            )
        o_ref[...] = acc.astype(o_ref.dtype)


# --------------------------------------------------------------------------- #
# Tile sizing / VMEM budgeting helpers
# --------------------------------------------------------------------------- #
def _default_tiles(N, num_A, as_itemsize, as_block_budget_bytes=24 << 20):
    # bk: lane (last) dim of the As block -> full N, or a multiple of 128
    # dividing N.
    bk = N
    for cand in (1024, 512, 256, 128):
        if N % cand == 0 and cand < N:
            bk = cand
            break
    # bm: row dim -> multiple of 8 dividing N; prefer < N so the "parallel"
    # grid axis has >= 2 tiles (v7x has 2 TensorCores per chip).
    bm = N
    for cand in (1024, 512, 256, 128, 64, 32, 16, 8):
        if N % cand == 0 and cand < N:
            bm = cand
            break

    def as_block_bytes(bm_, bk_):          # double-buffered As block
        return 2 * num_A * bm_ * bk_ * as_itemsize

    while (as_block_bytes(bm, bk) > as_block_budget_bytes
           and bm > 8 and (bm // 2) % 8 == 0 and N % (bm // 2) == 0):
        bm //= 2
    while (as_block_bytes(bm, bk) > as_block_budget_bytes
           and bk > 128 and (bk // 2) % 128 == 0 and N % (bk // 2) == 0):
        bk //= 2
    return bm, bk


def _vmem_bytes_estimate(num_A, bm, bk, in_c, out_c_p, as_it, h_it):
    lane = lambda x: ((x + 127) // 128) * 128
    sub = lambda x: ((x + 7) // 8) * 8
    b = 0
    b += 2 * num_A * sub(bm) * lane(bk) * as_it        # As (double-buffered)
    b += 2 * sub(bk) * lane(in_c) * h_it               # H
    b += 2 * num_A * sub(in_c) * lane(out_c_p) * 4     # W_eff (f32)
    b += 2 * sub(bm) * lane(out_c_p) * 4               # output
    b += num_A * sub(bm) * lane(in_c) * 4              # AH scratch
    return b


# --------------------------------------------------------------------------- #
# Wrapper
# --------------------------------------------------------------------------- #
def gt_layer_forward(As, H, weight, att_weight, *, block_m=None, block_k=None,
                     compute_dtype=None, vmem_limit_bytes=None):
    """GTLayer forward (dropout=0). Returns (N, out_channels) float32.

    block_m: row tile of N (multiple of 8, or N).  Prefer < N so the
             "parallel" axis has >= 2 tiles (v7x megacore).
    block_k: contraction tile of N; it is the LANE dim of the As block, so it
             must equal N or be a multiple of 128 dividing N.
    compute_dtype: dtype for the streamed As / H (e.g. jnp.bfloat16 to halve
             the HBM-bound As traffic; 0/1 adjacency values are exact in bf16).
             Score math, W_eff and all accumulation stay float32.
    """
    num_A, N, N2 = As.shape
    assert N == N2, "adjacency matrices must be square"
    N_h, in_c = H.shape
    assert N_h == N
    num_channels, in_c_w, out_c = weight.shape
    assert in_c_w == in_c
    assert att_weight.shape == (num_channels, in_c, num_A)

    # ---- Host-side (f32): channel scores folded into per-adjacency weights --
    w_f32 = weight.astype(jnp.float32)
    att_f32 = att_weight.astype(jnp.float32)
    att_mean = jnp.mean(att_f32, axis=1)                       # (nc, num_A)
    score = jax.nn.softmax(att_mean, axis=1) / num_channels    # (nc, num_A)
    w_eff = jnp.einsum('ca,cio->aio', score, w_f32)            # (num_A, in_c, out_c)

    # ---- Lane-dense output: pad out_c to a multiple of 128 (padding in W) ---
    out_c_p = ((out_c + 127) // 128) * 128
    if out_c_p != out_c:
        w_eff = jnp.pad(w_eff, ((0, 0), (0, 0), (0, out_c_p - out_c)))

    if compute_dtype is not None:
        As = As.astype(compute_dtype)
        H = H.astype(compute_dtype)

    as_itemsize = jnp.dtype(As.dtype).itemsize
    h_itemsize = jnp.dtype(H.dtype).itemsize

    bm_def, bk_def = _default_tiles(N, num_A, as_itemsize)
    bm = bm_def if block_m is None else min(block_m, N)
    bk = bk_def if block_k is None else min(block_k, N)
    assert N % bm == 0 and N % bk == 0, "N must be divisible by the tile sizes"
    assert bm % 8 == 0, "block_m must be a multiple of 8"
    assert bk == N or bk % 128 == 0, \
        "block_k must equal N or be a multiple of 128 (lane dim of the As block)"

    grid = (N // bm, N // bk)

    if vmem_limit_bytes is None:
        est = _vmem_bytes_estimate(num_A, bm, bk, in_c, out_c_p,
                                   as_itemsize, h_itemsize)
        if est > (32 << 20):                      # scoped-VMEM default
            vmem_limit_bytes = min(int(est * 1.25), 112 << 20)

    params = dict(dimension_semantics=("parallel", "arbitrary"))
    if vmem_limit_bytes is not None:
        params["vmem_limit_bytes"] = vmem_limit_bytes

    out_padded = pl.pallas_call(
        _gt_layer_kernel,
        out_shape=jax.ShapeDtypeStruct((N, out_c_p), jnp.float32),
        grid_spec=pltpu.PrefetchScalarGridSpec(
            num_scalar_prefetch=0,
            grid=grid,
            in_specs=[
                pl.BlockSpec((num_A, bm, bk), lambda i, k: (0, i, k)),
                pl.BlockSpec((bk, in_c), lambda i, k: (k, 0)),
                pl.BlockSpec((num_A, in_c, out_c_p), lambda i, k: (0, 0, 0)),
            ],
            out_specs=pl.BlockSpec((bm, out_c_p), lambda i, k: (i, 0)),
            scratch_shapes=[pltpu.VMEM((num_A, bm, in_c), jnp.float32)],
        ),
        compiler_params=pltpu.CompilerParams(**params),
    )(As, H, w_eff)

    return out_padded[:, :out_c] if out_c_p != out_c else out_padded


# --------------------------------------------------------------------------- #
# Pure-JAX reference (mirrors the PyTorch forward, dropout=0)
# --------------------------------------------------------------------------- #
def gt_layer_ref(As, H, weight, att_weight):
    outs = []
    for c in range(weight.shape[0]):
        Hc = H @ weight[c]
        score = jax.nn.softmax(att_weight[c].mean(axis=0))
        A_comb = jnp.einsum('a,aij->ij', score, As)
        outs.append(A_comb @ Hc)
    return jnp.stack(outs, axis=0).mean(axis=0)


def _xavier_uniform(key, shape):
    # Matches torch.nn.init.xavier_uniform_ fan computation for >=2-D tensors.
    receptive = int(np.prod(shape[2:])) if len(shape) > 2 else 1
    fan_in = shape[1] * receptive
    fan_out = shape[0] * receptive
    bound = float(np.sqrt(6.0 / (fan_in + fan_out)))
    return jax.random.uniform(key, shape, jnp.float32, -bound, bound)


if __name__ == "__main__":
    # Small shapes consistent with the module's forward.
    N = 16            # number of graph nodes
    in_channels = 8
    out_channels = 32
    num_A = 3         # number of adjacency (edge-type) matrices
    num_channels = 2  # GT channels

    key = jax.random.PRNGKey(0)
    k_w, k_a, k_adj, k_h = jax.random.split(key, 4)

    weight = _xavier_uniform(k_w, (num_channels, in_channels, out_channels))
    att_weight = _xavier_uniform(k_a, (num_channels, in_channels, num_A))

    # Dense adjacency stack standing in for the list of sparse COO matrices.
    As = (jax.random.uniform(k_adj, (num_A, N, N)) < 0.3).astype(jnp.float32)
    H = jax.random.normal(k_h, (N, in_channels), jnp.float32)

    out = gt_layer_forward(As, H, weight, att_weight)
    out = jax.block_until_ready(out)

    ref = gt_layer_ref(As, H, weight, att_weight)
    assert out.shape == (N, out_channels)
    assert jnp.allclose(out, ref, atol=2e-5, rtol=2e-5), "mismatch vs reference"

    # TODO(synk): dropout path omitted (dropout=0.0 in the default module config).
    print("KERNEL_OK")
</pallas_src>

<mosaic_0001>
module attributes {stable_mosaic.version = 11 : i64} {
  func.func @_gt_layer_kernel(%arg0: i32, %arg1: i32, %arg2: memref<3x8x16xf32, #tpu.memory_space<vmem>>, %arg3: memref<16x8xf32, #tpu.memory_space<vmem>>, %arg4: memref<3x8x128xf32, #tpu.memory_space<vmem>>, %arg5: memref<8x128xf32, #tpu.memory_space<vmem>>, %arg6: memref<3x8x8xf32, #tpu.memory_space<vmem>>) attributes {dimension_semantics = [#tpu.dimension_semantics<parallel>, #tpu.dimension_semantics<arbitrary>], iteration_bounds = array<i64: 2, 1>, scalar_prefetch = 0 : i64, scratch_operands = 1 : i64, tpu.core_type = #tpu.core_type<tc>, window_params = [{transform_indices = @transform_0, window_bounds = array<i64: 3, 8, 16>}, {transform_indices = @transform_1, window_bounds = array<i64: 16, 8>}, {pipeline_mode = #tpu.pipeline_mode<synchronous>, transform_indices = @transform_2, window_bounds = array<i64: 3, 8, 128>}, {transform_indices = @transform_3, window_bounds = array<i64: 8, 128>}]} {
    %c0_i32 = arith.constant 0 : i32
    %0 = arith.cmpi eq, %arg1, %c0_i32 : i32
    %1 = arith.extui %0 : i1 to i32
    %c0_i32_0 = arith.constant 0 : i32
    %2 = arith.cmpi ne, %1, %c0_i32_0 : i32
    scf.if %2 {
      %cst_13 = arith.constant 0.000000e+00 : f32
      %14 = vector.broadcast %cst_13 : f32 to vector<3x8x8xf32>
      %c0_14 = arith.constant 0 : index
      %c0_15 = arith.constant 0 : index
      %c0_16 = arith.constant 0 : index
      %15 = vector.load %arg6[%c0_14, %c0_15, %c0_16] : memref<3x8x8xf32, #tpu.memory_space<vmem>>, vector<3x8x8xf32>
      tpu.vector_store %arg6[%c0_14, %c0_15, %c0_16], %14 {strides = array<i32>} : memref<3x8x8xf32, #tpu.memory_space<vmem>>, vector<3x8x8xf32>,
    } else {
    }
    %c0 = arith.constant 0 : index
    %c0_1 = arith.constant 0 : index
    %c0_2 = arith.constant 0 : index
    %3 = vector.load %arg2[%c0, %c0_1, %c0_2] : memref<3x8x16xf32, #tpu.memory_space<vmem>>, vector<3x8x16xf32>
    %4 = vector.shape_cast %3 : vector<3x8x16xf32> to vector<24x16xf32>
    %c0_3 = arith.constant 0 : index
    %c0_4 = arith.constant 0 : index
    %c0_5 = arith.constant 0 : index
    %5 = vector.load %arg6[%c0_3, %c0_4, %c0_5] : memref<3x8x8xf32, #tpu.memory_space<vmem>>, vector<3x8x8xf32>
    %c0_6 = arith.constant 0 : index
    %c0_7 = arith.constant 0 : index
    %6 = vector.load %arg3[%c0_6, %c0_7] : memref<16x8xf32, #tpu.memory_space<vmem>>, vector<16x8xf32>
    %cst = arith.constant dense<0.000000e+00> : vector<24x8xf32>
    %7 = tpu.matmul %4, %6, %cst {dimension_numbers = #tpu.dot_dimension_numbers<[1], [0], [0], [1], [0, 0, 1, 1], [], []>} : vector<24x16xf32>, vector<16x8xf32>, vector<24x8xf32> -> vector<24x8xf32>
    %8 = vector.shape_cast %7 : vector<24x8xf32> to vector<3x8x8xf32>
    %9 = arith.addf %5, %8 : vector<3x8x8xf32>
    %c0_8 = arith.constant 0 : index
    %c0_9 = arith.constant 0 : index
    %c0_10 = arith.constant 0 : index
    %10 = vector.load %arg6[%c0_8, %c0_9, %c0_10] : memref<3x8x8xf32, #tpu.memory_space<vmem>>, vector<3x8x8xf32>
    tpu.vector_store %arg6[%c0_8, %c0_9, %c0_10], %9 {strides = array<i32>} : memref<3x8x8xf32, #tpu.memory_space<vmem>>, vector<3x8x8xf32>,
    %c0_i32_11 = arith.constant 0 : i32
    %11 = arith.cmpi eq, %arg1, %c0_i32_11 : i32
    %12 = arith.extui %11 : i1 to i32
    %c0_i32_12 = arith.constant 0 : i32
    %13 = arith.cmpi ne, %12, %c0_i32_12 : i32
    scf.if %13 {
      %cst_13 = arith.constant 0.000000e+00 : f32
      %14 = vector.broadcast %cst_13 : f32 to vector<8x128xf32>
      %c0_14 = arith.constant 0 : index
      %c0_15 = arith.constant 0 : index
      %c0_16 = arith.constant 0 : index
      %15 = vector.load %arg6[%c0_14, %c0_15, %c0_16] : memref<3x8x8xf32, #tpu.memory_space<vmem>>, vector<1x8x8xf32>
      %16 = vector.shape_cast %15 : vector<1x8x8xf32> to vector<8x8xf32>
      %c0_17 = arith.constant 0 : index
      %c0_18 = arith.constant 0 : index
      %c0_19 = arith.constant 0 : index
      %17 = vector.load %arg4[%c0_17, %c0_18, %c0_19] : memref<3x8x128xf32, #tpu.memory_space<vmem>>, vector<1x8x128xf32>
      %18 = vector.shape_cast %17 : vector<1x8x128xf32> to vector<8x128xf32>
      %cst_20 = arith.constant dense<0.000000e+00> : vector<8x128xf32>
      %19 = tpu.matmul %16, %18, %cst_20 {dimension_numbers = #tpu.dot_dimension_numbers<[1], [0], [0], [1], [0, 0, 1, 1], [], []>} : vector<8x8xf32>, vector<8x128xf32>, vector<8x128xf32> -> vector<8x128xf32>
      %20 = arith.addf %14, %19 : vector<8x128xf32>
      %c1 = arith.constant 1 : index
      %c0_21 = arith.constant 0 : index
      %c0_22 = arith.constant 0 : index
      %21 = vector.load %arg6[%c1, %c0_21, %c0_22] : memref<3x8x8xf32, #tpu.memory_space<vmem>>, vector<1x8x8xf32>
      %22 = vector.shape_cast %21 : vector<1x8x8xf32> to vector<8x8xf32>
      %c1_23 = arith.constant 1 : index
      %c0_24 = arith.constant 0 : index
      %c0_25 = arith.constant 0 : index
      %23 = vector.load %arg4[%c1_23, %c0_24, %c0_25] : memref<3x8x128xf32, #tpu.memory_space<vmem>>, vector<1x8x128xf32>
      %24 = vector.shape_cast %23 : vector<1x8x128xf32> to vector<8x128xf32>
      %cst_26 = arith.constant dense<0.000000e+00> : vector<8x128xf32>
      %25 = tpu.matmul %22, %24, %cst_26 {dimension_numbers = #tpu.dot_dimension_numbers<[1], [0], [0], [1], [0, 0, 1, 1], [], []>} : vector<8x8xf32>, vector<8x128xf32>, vector<8x128xf32> -> vector<8x128xf32>
      %26 = arith.addf %20, %25 : vector<8x128xf32>
      %c2 = arith.constant 2 : index
      %c0_27 = arith.constant 0 : index
      %c0_28 = arith.constant 0 : index
      %27 = vector.load %arg6[%c2, %c0_27, %c0_28] : memref<3x8x8xf32, #tpu.memory_space<vmem>>, vector<1x8x8xf32>
      %28 = vector.shape_cast %27 : vector<1x8x8xf32> to vector<8x8xf32>
      %c2_29 = arith.constant 2 : index
      %c0_30 = arith.constant 0 : index
      %c0_31 = arith.constant 0 : index
      %29 = vector.load %arg4[%c2_29, %c0_30, %c0_31] : memref<3x8x128xf32, #tpu.memory_space<vmem>>, vector<1x8x128xf32>
      %30 = vector.shape_cast %29 : vector<1x8x128xf32> to vector<8x128xf32>
      %cst_32 = arith.constant dense<0.000000e+00> : vector<8x128xf32>
      %31 = tpu.matmul %28, %30, %cst_32 {dimension_numbers = #tpu.dot_dimension_numbers<[1], [0], [0], [1], [0, 0, 1, 1], [], []>} : vector<8x8xf32>, vector<8x128xf32>, vector<8x128xf32> -> vector<8x128xf32>
      %32 = arith.addf %26, %31 : vector<8x128xf32>
      %c0_33 = arith.constant 0 : index
      %c0_34 = arith.constant 0 : index
      %33 = vector.load %arg5[%c0_33, %c0_34] : memref<8x128xf32, #tpu.memory_space<vmem>>, vector<8x128xf32>
      tpu.vector_store %arg5[%c0_33, %c0_34], %32 {strides = array<i32>} : memref<8x128xf32, #tpu.memory_space<vmem>>, vector<8x128xf32>,
    } else {
    }
    return
  }
  func.func @transform_0(%arg0: i32, %arg1: i32) -> (i32, i32, i32) {
    %c0_i32 = arith.constant 0 : i32
    %c0_i32_0 = arith.constant 0 : i32
    return %c0_i32, %arg0, %arg1 : i32, i32, i32
  }
  func.func @transform_1(%arg0: i32, %arg1: i32) -> (i32, i32) {
    %c0_i32 = arith.constant 0 : i32
    %c0_i32_0 = arith.constant 0 : i32
    return %arg1, %c0_i32 : i32, i32
  }
  func.func @transform_2(%arg0: i32, %arg1: i32) -> (i32, i32, i32) {
    %c0_i32 = arith.constant 0 : i32
    %c0_i32_0 = arith.constant 0 : i32
    %c0_i32_1 = arith.constant 0 : i32
    %c0_i32_2 = arith.constant 0 : i32
    return %c0_i32, %c0_i32_0, %c0_i32_1 : i32, i32, i32
  }
  func.func @transform_3(%arg0: i32, %arg1: i32) -> (i32, i32) {
    %c0_i32 = arith.constant 0 : i32
    %c0_i32_0 = arith.constant 0 : i32
    return %arg0, %c0_i32 : i32, i32
  }
}

</mosaic_0001>

<bundles_post_ra>
// kernel: tpu_custom_call.1
= control target key start
LH: loop header
LB: loop body
LE: loop exit
PB: predicated region body
PF: predicated region fallthrough
CT: control target
= control target key end

     0   :  { %8 = vsyncpa [#allocation4], 0  ;;  %s1160_s0 = inlined_call_operand.hbm [shape: f32[3,16,16], index: 0, kind: input, shape index: {}]   ;;  %s1161_s1 = inlined_call_operand.vmem [shape: f32[16,8], index: 1, kind: input, shape index: {}]   ;;  %s1162_s2 = inlined_call_operand.vmem [shape: f32[3,8,128], index: 2, kind: input, shape index: {}]   ;;  %s1163_s3 = inlined_call_operand.hbm [shape: f32[16,128], index: 3, kind: output, shape index: {}]  }
   0x1   :  { %10 = vsyncpa [#allocation4 + $0x1], 0 }
   0x2   :  { %11 = vsyncpa [#allocation5], 0 }
   0x3   :  { %13 = vsyncpa [#allocation5 + $0x1], 0  ;;  %s958_s12 = smov 0   ;;  %s960_s13 = smov 0  }
   0x4   :  { %s962_s14 = smov 0   ;;  %s964_s15 = smov 0  }
   0x5   :  { %s966_s16 = smov 0   ;;  %s968_s17 = smov 0  }
   0x6 LB: > { %s680_s18 = sadd.s32 4294967295, %s928_s17   ;;  %s681_s19 = sadd.s32 4294967294, %s928_s17   ;;  %s928_s17 = sphi %s968_s17, %s19_s17   ;;  %s924_s16 = sphi %s966_s16, %s1177_s16   ;;  %s920_s15 = sphi %s964_s15, %s1176_s15   ;;  %s916_s14 = sphi %s962_s14, %s1175_s14   ;;  %s912_s13 = sphi %s960_s13, %s1174_s13   ;;  %s908_s12 = sphi %s958_s12, %s1173_s12  }
   0x7   : > { %s31_s20 = sadd.s32 1, %s924_s16  ;;  %s40_s21 = sadd.s32 1, %s916_s14 }
   0x8   : > { %p33_p0 = scmp.ge.s32.totalorder %s31_s20, 2  ;;  %p47_p1 = scmp.ne.s32.totalorder %s916_s14, %s912_s13 }
   0x9   : > { %p48_p2 = scmp.eq.s32.totalorder %s928_s17, 0  ;;  %p53_p3 = scmp.ne.s32.totalorder %s912_s13, %s908_s12 }
   0xa   : > { %s1179_s20 = smov (%p33_p0, %s31_s20), 0  ;;  %p54_p5 = scmp.eq.s32.totalorder %s680_s18, 0 }
   0xb   : > { %p999_p4 = por %p48_p2, %p47_p1  ;;  %s35_s23 = ssub.s32 %s924_s16, %s1179_s20 }
   0xc   : > { %p124_p6 = scmp.eq.s32.totalorder %s680_s18, 1  ;;  %p38_p7 = scmp.eq.s32.totalorder %s35_s23, 0 }
   0xd   : > { %p1005_p8 = por %p54_p5, %p53_p3  ;;  %p130_p10 = scmp.eq.s32.totalorder %s681_s19, 1 }
   0xe   : > { %p1009_p9 = por %p124_p6, %p47_p1  ;;  %p760_p13 = scmp.lt.s32.totalorder %s928_s17, 2 }
   0xf   : > { %s1014_s26 = scalar_select %p38_p7, %s916_s14, %s40_s21  }
  0x10   : > { %s1167_s25 = scalar_select %p1009_p9, 1, 0 }
  0x11   : > { %p1016_p11 = por %p130_p10, %p53_p3  ;;  %s162_s28 = sand.u32 1, %s916_s14  }
  0x12   : > { %s746_s29 = smul.u32 24, %s162_s28  ;;  %s685_s30 = sshll.u32 %s924_s16, 7 }
  0x13   : > { %s1168_s27 = scalar_select %p1016_p11, 1, 0 }
  0x14   : > { %p1026_p0 = pnand %p760_p13, %p999_p4  ;;  %s1033_s7 = scalar_lea.hbm %s1160_s0, %s685_s30 }
  0x15   : > { %s166_s8 = scalar_lea.vmem [#allocation3], %s746_s29  ;;  %s1037_s10 = scalar_lea.sflag [#allocation4], %s162_s28 }
  0x16   : > { %s173_s9 = sshll.u32 %s166_s8, 4  ;;  %s816_s11 = scalar_lea.hbm %s1033_s7, 384  ;;  %s1035_s9 = int_to_ptr.vmem [resolvable:$true] %s173_s9 }
  0x17   : > { %p817_p1 = scmp.ne.s32.totalorder %s1033_s7, %s816_s11  ;;  %p818_p2 = pneg %p1026_p0 }
  0x18   : > { %s821_s21 = scalar_lea.hbm %s1160_s0, 768  ;;  %p822_p5 = scmp.lt.u32.totalorder %s1033_s7, %s1160_s0 }
  0x19   : > { %p819_p3 = pnand %p818_p2, %p817_p1  ;;  %p823_p6 = scmp.lt.u32.totalorder %s821_s21, %s816_s11 }
  0x1a   : > { %p825_p10 = scmp.lt.u32.totalorder %s816_s11, %s1033_s7 }
  0x1b   : > { %p820_p4 = pneg %p819_p3  ;;  %p824_p7 = por %p823_p6, %p822_p5 }
  0x1d   : > { %p826_p13 = por %p825_p10, %p824_p7 }
  0x1f   : > { %p827_p12 = pnand %p826_p13, %p820_p4 }
  0x21   : > { %830 = shalt.err (!%p827_p12)
}
  0x22   : > { %s831_s28 = scalar_lea.vmem %s1035_s9, 384  ;;  %s930_s29 = smov [#allocation3]  }
  0x23   : > { %p832_p1 = scmp.ne.s32.totalorder %s1035_s9, %s831_s28  ;;  %s836_s30 = sshll.u32 %s930_s29, 4  ;;  %s837_s30 = int_to_ptr.vmem [resolvable:$false] %s836_s30 }
  0x24   : > { %s838_s5 = scalar_lea.vmem %s837_s30, 768  ;;  %p839_p9 = scmp.lt.s32.totalorder %s1035_s9, %s837_s30 }
  0x25   : > { %p834_p3 = pnand %p832_p1, %p818_p2  ;;  %p840_p5 = scmp.lt.s32.totalorder %s838_s5, %s831_s28 }
  0x27   : > { %p835_p11 = pneg %p834_p3  ;;  %p841_p6 = por %p840_p5, %p839_p9 }
  0x29   : > { %p842_p7 = pnand %p841_p6, %p835_p11 }
  0x2b   : > { %845 = shalt.err (!%p842_p7)
}
  0x2c   : > { %s931_s6 = smov 256   ;;  %s932_s8 = smov 128  }
  0x2d   : > { %s933_s11 = smov 8   ;;  %p686_p12 = scmp.ge.s32.totalorder %s928_s17, 1 }
  0x2e   : > { %755 = dma.hbm_to_vmem [thread:$0]  (!%p1026_p0), %s1033_s7, 384, %s1035_s9, %s1037_s10, %s931_s6, %s932_s8, %s933_s11  }
  0x2f   : > { %p181_p2 = scmp.lt.s32.totalorder %s928_s17, 3 }
  0x31   : > { %p182_p4 = pnand %p686_p12, %p181_p2 }
  0x32   : > { %s1068_s18 = sand.u32 (!%p182_p4), 1, %s912_s13  }
  0x33   : > { %185 = sbr.rel (%p182_p4) target bundleno = 534 (0x216), region = 32  ;;  %s188_s21 = scalar_lea.sflag (!%p182_p4), [#allocation4], %s1068_s18 }
  0x34   : > { %s747_s19 = smul.u32 (!%p182_p4), 24, %s1068_s18 }
  0x36   : > { %s191_s22 = scalar_lea.vmem (!%p182_p4), [#allocation3], %s747_s19 }
  0x3a   : > { %899 = dma.done.wait (%p1005_p8), %s188_s21, 384  }
  0x3b   : > { %901 = vsyncadd (%p1005_p8), %s188_s21, 4294966912  ;;  %v934_v0 = vmov 0.0|0.0   ;;  %vm935_vm0 = vmmov 0   ;;  %v936_v1 = vmov 0.0   ;;  %vm229_vm1 = vcmask 64512   ;;  %v239_v2 = vld [vmem:[%s1161_s1] sm:$0xff] }
  0x3c   : > { %739 = vmatprep.subr.bf16.mxu0 %v934_v0  ;;  %715 = vmatprep.mubr.msk.f32.mxu0 %vm935_vm0, %v936_v1  ;;  %230 = vst.msk [vmem:[#allocation2] sm:$0xff] %vm229_vm1, %v936_v1  ;;  %231 = vst.msk [vmem:[#allocation2 + $0x8] sm:$0xff] %vm229_vm1, %v936_v1  ;;  %v240_v3 = vld [vmem:[%s1161_s1 + $0x8] sm:$0xff]  ;;  %v233_v5 = vld [vmem:[%s191_s22] sm:$0xff]  ;;  %vm241_vm2 = vcmask 130048   ;;  %s687_s6 = sshll.u32 %s1068_s18, 3 }
  0x3d   : > { %232 = vst.msk [vmem:[#allocation2 + $0x10] sm:$0xff] %vm229_vm1, %v936_v1  ;;  %724 = vmatprep.subr.mxu1 %v936_v1  ;;  %726 = vmatprep.mubr.msk.f32.mxu1 %vm935_vm0, %v936_v1  ;;  %v740_v4 = vpack.c.bf16 %v240_v3, %v239_v2  ;;  %v234_v6 = vld [vmem:[%s191_s22 + $0x8] sm:$0xff]  ;;  %v235_v7 = vld [vmem:[%s191_s22 + $0x10] sm:$0xff]  ;;  %v694_v23 = vld [vmem:[%s1162_s2 + $0x10] sm:$0xff]  ;;  %s218_s8 = scalar_lea.vmem [#allocation6], %s687_s6  ;;  %s697_s19 = sshll.u32 %s920_s15, 7 }
  0x3e   : > { %v691_v8 = vld [vmem:[%s1162_s2 + $0x8] sm:$0xff]  ;;  %v342_v21 = vld [vmem:[%s1162_s2] sm:$0xff]  ;;  %s586_s11 = sshll.u32 %s218_s8, 4  ;;  %s1113_s4 = scalar_lea.hbm %s1163_s3, %s697_s19  ;;  %s1108_s11 = int_to_ptr.vmem [resolvable:$true] %s586_s11 }
  0x3f   : > { %741 = vmatpush3.bf16.msra.mxu0 %v740_v4  ;;  %725 = vmatpush3.msra.mxu1 %v691_v8  ;;  %s573_s7 = scalar_lea.sflag [#allocation5], %s1068_s18  ;;  %s846_s24 = scalar_lea.vmem %s1108_s11, 128 }
  0x40   : > { %729 = vmatprep.subr.mxu1 %v936_v1  ;;  %p847_p8 = scmp.ne.s32.totalorder %s1108_s11, %s846_s24  ;;  %p1170_p9 = scmp.ne.s32.totalorder %s1167_s25, 0 }
  0x41   : > { %s937_s15 = smov [#allocation6]  }
  0x42   : > { %716 = vmatmul.mubr.msk.f32.vlgmr.msra.gmra.mrb[0].mxu0 %vm241_vm2, %v233_v5  ;;  %p848_p11 = pnand %p847_p8, %p1170_p9  ;;  %s850_s9 = sshll.u32 %s937_s15, 4  ;;  %s851_s9 = int_to_ptr.vmem [resolvable:$false] %s850_s9 }
  0x43   : > { %718 = vmatprep.mubr.msk.f32.mxu0 %vm935_vm0, %v936_v1  ;;  %v236_v9 = vld [vmem:[#allocation2] sm:$0xff]  ;;  %v237_v13 = vld [vmem:[#allocation2 + $0x8] sm:$0xff]  ;;  %s852_s10 = scalar_lea.vmem %s851_s9, 256  ;;  %p853_p10 = scmp.lt.s32.totalorder %s1108_s11, %s851_s9 }
  0x44   : > { %v238_v17 = vld [vmem:[#allocation2 + $0x10] sm:$0xff]  ;;  %p849_p0 = pneg %p848_p11  ;;  %p854_p13 = scmp.lt.s32.totalorder %s852_s10, %s846_s24 }
  0x46   : > { %719 = vmatmul.mubr.msk.f32.gmra.mrb[2].mxu0 %vm241_vm2, %v234_v6  ;;  %p855_p1 = por %p854_p13, %p853_p10 }
  0x47   : > { %721 = vmatprep.mubr.msk.f32.mxu0 %vm935_vm0, %v936_v1 }
  0x48   : > { %p856_p3 = pnand %p855_p1, %p849_p0 }
  0x4a   : > { %722 = vmatmul.mubr.msk.f32.gmra.mrb[4].mxu0 %vm241_vm2, %v235_v7 }
 0x115   : > { %v317_v10 = vpop.f32.mrb[0].mxu0 }
 0x116   : > { %v331_v11 = vadd.f32 %v317_v10, %v236_v9  ;;  %v717_v12 = vpop.f32.mrb[1].mxu0 }
 0x118   : > { %335 = vst.msk [vmem:[#allocation2] sm:$0xff] %vm229_vm1, %v331_v11 }
 0x119   : > { %v322_v14 = vpop.f32.mrb[2].mxu0 }
 0x11a   : > { %v332_v15 = vadd.f32 %v322_v14, %v237_v13  ;;  %v720_v16 = vpop.f32.mrb[3].mxu0 }
 0x11c   : > { %336 = vst.msk [vmem:[#allocation2 + $0x8] sm:$0xff] %vm229_vm1, %v332_v15 }
 0x11d   : > { %v327_v18 = vpop.f32.mrb[4].mxu0 }
 0x11e   : > { %v333_v19 = vadd.f32 %v327_v18, %v238_v17  ;;  %v723_v20 = vpop.f32.mrb[5].mxu0 }
 0x11f   : > { %v341_v24 = vld [vmem:[#allocation2] sm:$0xff] }
 0x120   : > { %337 = vst.msk [vmem:[#allocation2 + $0x10] sm:$0xff] %vm229_vm1, %v333_v19 }
 0x123   : > { %v344_v22 = vld [vmem:[#allocation2 + $0x8] sm:$0xff] }
 0x124   : > { %727 = vmatmul.mubr.msk.f32.vlgmr.msra.gmra.mrb[0].mxu1 %vm229_vm1, %v344_v22 }
 0x125   : > { %730 = vmatpush3.msra.mxu1 %v342_v21  ;;  %731 = vmatprep.mubr.msk.f32.mxu1 %vm935_vm0, %v936_v1 }
 0x126   : > { %734 = vmatprep.subr.mxu1 %v936_v1 }
 0x127   : > { %v494_v25 = vld [vmem:[#allocation2 + $0x10] sm:$0xff] }
 0x12c   : > { %732 = vmatmul.mubr.msk.f32.vlgmr.msra.gmra.mrb[0].mxu1 %vm229_vm1, %v341_v24 }
 0x12d   : > { %735 = vmatpush3.msra.mxu1 %v694_v23  ;;  %736 = vmatprep.mubr.msk.f32.mxu1 %vm935_vm0, %v936_v1 }
 0x134   : > { %737 = vmatmul.mubr.msk.f32.vlgmr.msra.gmra.mrb[0].mxu1 %vm229_vm1, %v494_v25 }
 0x207   : > { %v566_v26 = vpop.f32.mrb[0].mxu1 }
 0x208   : > { %571 = vst [vmem:[%s218_s8] sm:$0xff] %v566_v26  ;;  %v738_v27 = vpop.f32.mrb[1].mxu1 }
 0x209   : > { %859 = shalt.err (!%p856_p3)
}
 0x20a   : > { %s860_s18 = scalar_lea.hbm %s1113_s4, 128  ;;  %s864_s29 = scalar_lea.hbm %s1163_s3, 256 }
 0x20b   : > { %p861_p5 = scmp.ne.s32.totalorder %s1113_s4, %s860_s18  ;;  %p865_p12 = scmp.lt.u32.totalorder %s1113_s4, %s1163_s3 }
 0x20c   : > { %p866_p2 = scmp.lt.u32.totalorder %s864_s29, %s860_s18  ;;  %p868_p8 = scmp.lt.u32.totalorder %s860_s18, %s1113_s4 }
 0x20d   : > { %p862_p6 = pnand %p861_p5, %p1170_p9 }
 0x20e   : > { %p867_p4 = por %p866_p2, %p865_p12 }
 0x20f   : > { %p863_p7 = pneg %p862_p6 }
 0x210   : > { %p869_p11 = por %p868_p8, %p867_p4 }
 0x212   : > { %p870_p0 = pnand %p869_p11, %p863_p7 }
 0x214   : > { %873 = shalt.err (!%p870_p0)
}
 0x215   : > { %750 = dma.vmem_to_hbm [thread:$0]  (%p1170_p9), %s1108_s11, 128, %s1113_s4, %s573_s7  }
 0x216 PF: > { %s598_s6 = sand.u32 1, %s908_s12   ;;  %p1171_p10 = scmp.ne.s32.totalorder %s1168_s27, 0 }
 0x217   : > { %p1172_p13 = scmp.ge.s32.totalorder %s928_s17, 2  ;;  %s599_s8 = scalar_lea.sflag [#allocation5], %s598_s6 }
 0x219   : > { %p757_p1 = pnand %p1172_p13, %p1171_p10 }
 0x21b   : > { %903 = dma.done.wait (!%p757_p1), %s599_s8, 128  }
 0x21c   : > { %905 = vsyncadd (!%p757_p1), %s599_s8, 4294967168  ;;  %s19_s17 = sadd.s32 1, %s928_s17   ;;  %s1173_s12 = smov %s912_s13 }
 0x21d   : > { %p16_p3 = scmp.ge.s32.totalorder %s19_s17, 4   ;;  %s1174_s13 = smov %s916_s14 }
 0x21e   : > { %s1175_s14 = smov %s1014_s26  ;;  %s1176_s15 = smov %s924_s16 }
 0x21f   : > { %s1177_s16 = smov %s1179_s20  ;;  %18 = sbr.rel (!%p16_p3) target bundleno = 6 (0x6), region = 92 }
 0x226   :  { %604 = vsyncpa [#allocation4], 1 }
 0x227   :  { %606 = vsyncpa [#allocation4 + $0x1], 1 }
 0x228   :  { %607 = vsyncpa [#allocation5], 1 }
 0x229   :  { %609 = vsyncpa [#allocation5 + $0x1], 1 }

</bundles_post_ra>
